<compile_context>
chip_gen: v6e
topology: v6e:2x2x1
jax: 0.10.0
libtpu: 0.0.40
codegen_flags: <defaults>
</compile_context>

<pallas_src>
import numpy as np
import jax
import jax.numpy as jnp
from jax.experimental import pallas as pl
from jax.experimental.pallas import tpu as pltpu


def adaptive_avgpool1d_matrix(L: int, nft: int) -> jnp.ndarray:
    """Exact AdaptiveAvgPool1d(nft) as an (L, nft) averaging matrix."""
    P = np.zeros((L, nft), dtype=np.float32)
    for j in range(nft):
        start = (j * L) // nft
        end = -((-(j + 1) * L) // nft)  # ceil((j+1)*L / nft)
        P[start:end, j] = 1.0 / float(end - start)
    return jnp.asarray(P)


def param_head_kernel(fp_ref, v_ref, b_ref, out_ref):
    # fp_ref:  (TB, c, npart, hs*w)  VMEM tile of TB samples (copy-free NCHW regroup)
    # v_ref:   (c, hs*w)             folded AdaptiveAvgPool1d + Linear(nft,1) weights
    # b_ref:   (1,)                  Linear bias (SMEM scalar)
    # out_ref: (TB, npart, 1)        per-part parameters for these samples
    x = fp_ref[...].astype(jnp.float32)             # stream fp once from HBM
    v = v_ref[...]
    weighted = x * v[None, :, None, :]              # VPU elementwise (broadcast TB, npart)
    red_c = jnp.sum(weighted, axis=1)               # (TB, npart, hw): cheap cross-vreg adds
    logits = jnp.sum(red_c, axis=2, keepdims=True)  # (TB, npart, 1): one XLU lane-reduce/row
    logits = logits + b_ref[0]
    param = jax.nn.sigmoid(logits) * 64.0 + 0.5
    out_ref[...] = jnp.clip(param, 1.0, 64.0)


def param_head_forward(fp, head_w, head_b, npart, nft, *, tile_budget_bytes=4 << 20):
    """fp: (n, c, h, w). Returns (n*npart,) float32 — matches ParamHead.forward."""
    n, c, h, w = fp.shape
    assert h % npart == 0
    hs = h // npart
    hw = hs * w
    L = c * hw

    # Fold pooling matrix and Linear weight: logits = fp_flat @ (P @ W^T) + b.
    # The fold order (c, hs, w) matches the permuted flatten, so v reshapes to (c, hw).
    P = adaptive_avgpool1d_matrix(L, nft)                               # (L, nft)
    v = (P @ head_w.reshape(nft, 1).astype(jnp.float32)).reshape(c, hw)

    # Copy-free regroup; no XLA transpose/copy of fp is ever materialized.
    fp4 = fp.reshape(n, c, npart, hw)

    # Samples per grid step: largest divisor of n whose fp tile fits the budget
    # (keeps double-buffered tiles well under every generation's scoped VMEM).
    per_sample_bytes = c * npart * hw * fp.dtype.itemsize
    tb = 1
    for d in range(1, n + 1):
        if n % d == 0 and d * per_sample_bytes <= tile_budget_bytes:
            tb = d
    grid = (n // tb,)

    block_bytes = tb * per_sample_bytes
    # 2x double-buffered input + one f32 elementwise temp + weights + headroom.
    vmem_limit = int(min(64 << 20,
                         max(16 << 20,
                             2 * block_bytes + tb * c * npart * hw * 4
                             + v.size * 4 + (1 << 20))))

    out = pl.pallas_call(
        param_head_kernel,
        out_shape=jax.ShapeDtypeStruct((n, npart, 1), jnp.float32),
        grid=grid,
        in_specs=[
            pl.BlockSpec((tb, c, npart, hw), lambda i: (i, 0, 0, 0)),
            pl.BlockSpec((c, hw), lambda i: (0, 0)),
            pl.BlockSpec(memory_space=pltpu.MemorySpace.SMEM),   # bias scalar
        ],
        out_specs=pl.BlockSpec((tb, npart, 1), lambda i: (i, 0, 0)),
        compiler_params=pltpu.CompilerParams(
            dimension_semantics=("parallel",),   # independent sample tiles
            vmem_limit_bytes=vmem_limit,
        ),
    )(fp4, v, head_b.reshape(1).astype(jnp.float32))
    return out.reshape(n * npart)


def param_head_reference(fp, head_w, head_b, npart, nft):
    """Plain-JAX reference mirroring the PyTorch forward literally (two-step path)."""
    n, c, h, w = fp.shape
    fp_flat = (
        fp.reshape(n, c, npart, h // npart, w)
          .transpose(0, 2, 1, 3, 4)
          .reshape(n * npart, -1)
    ).astype(jnp.float32)
    P = adaptive_avgpool1d_matrix(fp_flat.shape[1], nft)
    tp = fp_flat @ P
    logits = tp @ head_w.reshape(nft, 1).astype(jnp.float32) + head_b.reshape(1, 1)
    param = jax.nn.sigmoid(logits) * 64.0 + 0.5
    return jnp.clip(param, 1.0, 64.0).reshape(-1)


if __name__ == "__main__":
    # Small shapes consistent with the module's forward.
    n, c, h, w = 2, 4, 16, 16
    npart = 4
    nft = 32

    key = jax.random.PRNGKey(0)
    k_x, k_w, k_b = jax.random.split(key, 3)

    x = jax.random.normal(k_x, (n, c, h, w), dtype=jnp.float32)

    # Linear(nft, 1) params (matches torch's uniform(-1/sqrt(nft), 1/sqrt(nft)) init).
    bound = 1.0 / np.sqrt(nft)
    head_w = jax.random.uniform(k_w, (1, nft), minval=-bound, maxval=bound, dtype=jnp.float32)
    head_b = jax.random.uniform(k_b, (1,), minval=-bound, maxval=bound, dtype=jnp.float32)

    # TODO(synk): cast_raw()/self.base (device-side buffer) and the ClipData custom
    # backward do not affect the forward output, so they are not part of the kernel.

    ref = param_head_reference(x, head_w, head_b, npart, nft)

    # Default tiling (all samples fit in one tile at these small shapes).
    out = param_head_forward(x, head_w, head_b, npart, nft)
    out = jax.block_until_ready(out)
    assert out.shape == (n * npart,)
    assert jnp.allclose(out, ref, atol=1e-4, rtol=1e-4), (out, ref)

    # Force a multi-step grid (1 sample per tile) to exercise the pipelined path.
    out_tiled = param_head_forward(
        x, head_w, head_b, npart, nft,
        tile_budget_bytes=c * npart * (h // npart) * w * 4)
    out_tiled = jax.block_until_ready(out_tiled)
    assert jnp.allclose(out_tiled, ref, atol=1e-4, rtol=1e-4), (out_tiled, ref)

    print("KERNEL_OK")
</pallas_src>

<mosaic_0001>
module attributes {stable_mosaic.version = 11 : i64} {
  func.func @param_head_kernel(%arg0: i32, %arg1: memref<2x4x4x64xf32, #tpu.memory_space<vmem>>, %arg2: memref<4x64xf32, #tpu.memory_space<vmem>>, %arg3: memref<1xf32, #tpu.memory_space<smem>>, %arg4: memref<2x4x1xf32, #tpu.memory_space<vmem>>) attributes {dimension_semantics = [#tpu.dimension_semantics<parallel>], iteration_bounds = array<i64: 1>, scalar_prefetch = 0 : i64, scratch_operands = 0 : i64, tpu.core_type = #tpu.core_type<tc>, window_params = [{transform_indices = @transform_0, window_bounds = array<i64: 2, 4, 4, 64>}, {pipeline_mode = #tpu.pipeline_mode<synchronous>, transform_indices = @transform_1, window_bounds = array<i64: 4, 64>}, {transform_indices = @transform_2, window_bounds = array<i64: 1>}, {transform_indices = @transform_3, window_bounds = array<i64: 2, 4, 1>}]} {
    %c0 = arith.constant 0 : index
    %c0_0 = arith.constant 0 : index
    %c0_1 = arith.constant 0 : index
    %c0_2 = arith.constant 0 : index
    %0 = vector.load %arg1[%c0, %c0_0, %c0_1, %c0_2] : memref<2x4x4x64xf32, #tpu.memory_space<vmem>>, vector<2x4x4x64xf32>
    %c0_3 = arith.constant 0 : index
    %c0_4 = arith.constant 0 : index
    %1 = vector.load %arg2[%c0_3, %c0_4] : memref<4x64xf32, #tpu.memory_space<vmem>>, vector<4x64xf32>
    %2 = vector.shape_cast %1 : vector<4x64xf32> to vector<1x4x1x64xf32>
    %3 = vector.broadcast %2 : vector<1x4x1x64xf32> to vector<2x4x4x64xf32>
    %4 = arith.mulf %0, %3 : vector<2x4x4x64xf32>
    %cst = arith.constant dense<0.000000e+00> : vector<2x4x64xf32>
    %5 = vector.multi_reduction <add>, %4, %cst [1] : vector<2x4x4x64xf32> to vector<2x4x64xf32>
    %cst_5 = arith.constant dense<0.000000e+00> : vector<2x4xf32>
    %6 = vector.multi_reduction <add>, %5, %cst_5 [2] : vector<2x4x64xf32> to vector<2x4xf32>
    %7 = vector.shape_cast %6 : vector<2x4xf32> to vector<2x4x1xf32>
    %c0_6 = arith.constant 0 : index
    %8 = memref.load %arg3[%c0_6] : memref<1xf32, #tpu.memory_space<smem>>
    %9 = vector.broadcast %8 : f32 to vector<2x4x1xf32>
    %10 = arith.addf %7, %9 : vector<2x4x1xf32>
    %11 = arith.negf %10 : vector<2x4x1xf32>
    %12 = math.exp %11 : vector<2x4x1xf32>
    %cst_7 = arith.constant 1.000000e+00 : f32
    %13 = vector.broadcast %cst_7 : f32 to vector<2x4x1xf32>
    %14 = arith.addf %13, %12 : vector<2x4x1xf32>
    %15 = arith.divf %13, %14 : vector<2x4x1xf32>
    %cst_8 = arith.constant 6.400000e+01 : f32
    %16 = vector.broadcast %cst_8 : f32 to vector<2x4x1xf32>
    %17 = arith.mulf %15, %16 : vector<2x4x1xf32>
    %cst_9 = arith.constant 5.000000e-01 : f32
    %18 = vector.broadcast %cst_9 : f32 to vector<2x4x1xf32>
    %19 = arith.addf %17, %18 : vector<2x4x1xf32>
    %cst_10 = arith.constant 1.000000e+00 : f32
    %cst_11 = arith.constant 6.400000e+01 : f32
    %20 = vector.broadcast %cst_10 : f32 to vector<2x4x1xf32>
    %21 = arith.maximumf %20, %19 : vector<2x4x1xf32>
    %22 = vector.broadcast %cst_11 : f32 to vector<2x4x1xf32>
    %23 = arith.minimumf %22, %21 : vector<2x4x1xf32>
    %c0_12 = arith.constant 0 : index
    %c0_13 = arith.constant 0 : index
    %c0_14 = arith.constant 0 : index
    %24 = vector.load %arg4[%c0_12, %c0_13, %c0_14] : memref<2x4x1xf32, #tpu.memory_space<vmem>>, vector<2x4x1xf32>
    tpu.vector_store %arg4[%c0_12, %c0_13, %c0_14], %23 {strides = array<i32>} : memref<2x4x1xf32, #tpu.memory_space<vmem>>, vector<2x4x1xf32>,
    return
  }
  func.func @transform_0(%arg0: i32) -> (i32, i32, i32, i32) {
    %c0_i32 = arith.constant 0 : i32
    %c0_i32_0 = arith.constant 0 : i32
    %c0_i32_1 = arith.constant 0 : i32
    %c0_i32_2 = arith.constant 0 : i32
    return %arg0, %c0_i32, %c0_i32_0, %c0_i32_1 : i32, i32, i32, i32
  }
  func.func @transform_1(%arg0: i32) -> (i32, i32) {
    %c0_i32 = arith.constant 0 : i32
    %c0_i32_0 = arith.constant 0 : i32
    %c0_i32_1 = arith.constant 0 : i32
    return %c0_i32, %c0_i32_0 : i32, i32
  }
  func.func @transform_2(%arg0: i32) -> i32 {
    %c0_i32 = arith.constant 0 : i32
    %c0_i32_0 = arith.constant 0 : i32
    return %c0_i32 : i32
  }
  func.func @transform_3(%arg0: i32) -> (i32, i32, i32) {
    %c0_i32 = arith.constant 0 : i32
    %c0_i32_0 = arith.constant 0 : i32
    %c0_i32_1 = arith.constant 0 : i32
    return %arg0, %c0_i32, %c0_i32_0 : i32, i32, i32
  }
}

</mosaic_0001>

<bundles_post_ra>
// kernel: tpu_custom_call.1
= control target key start
LH: loop header
LB: loop body
LE: loop exit
PB: predicated region body
PF: predicated region fallthrough
CT: control target
= control target key end

     0   :  { %9 = vsyncpa [#allocation4], 0  ;;  %s267_s0 = inlined_call_operand.hbm [shape: f32[2,4,4,64], index: 0, kind: input, shape index: {}]   ;;  %s268_s1 = inlined_call_operand.hbm [shape: f32[4,64], index: 1, kind: input, shape index: {}]   ;;  %s269_s2 = inlined_call_operand.<no memory space> [shape: f32[1], index: 2, kind: input, shape index: {}]   ;;  %s270_s3 = inlined_call_operand.vmem [shape: f32[2,4,1], index: 3, kind: output, shape index: {}]  }
   0x1   :  { %10 = vsyncpa [#allocation6], 0  ;;  %s217_s12 = smov [#allocation3]  }
   0x2   :  { %s16_s13 = sshll.u32 %s217_s12, 4  ;;  %s17_s13 = int_to_ptr.vmem [resolvable:$true] %s16_s13 }
   0x3   :  { %s181_s14 = scalar_lea.vmem %s17_s13, 512  ;;  %p186_p1 = scmp.lt.s32.totalorder %s17_s13, %s17_s13 }
   0x4   :  { %p182_p0 = scmp.ne.s32.totalorder %s17_s13, %s181_s14  ;;  %p187_p2 = scmp.lt.s32.totalorder %s181_s14, %s181_s14 }
   0x6   :  { %p188_p3 = por %p187_p2, %p186_p1 }
   0x8   :  { %p189_p4 = pnand %p188_p3, %p182_p0 }
   0xa   :  { %192 = shalt.err (!%p189_p4)
}
   0xb   :  { %s218_s15 = smov 64   ;;  %s219_s16 = smov 4  }
   0xc   :  { %22 = dma.hbm_to_vmem [thread:$0]  %s267_s0, 512, %s17_s13, [#allocation4], %s218_s15, %s218_s15, %s219_s16  }
   0xd   :  { %s220_s19 = smov [#allocation5]  }
   0xe   :  { %s29_s20 = sshll.u32 %s220_s19, 4  ;;  %s30_s20 = int_to_ptr.vmem [resolvable:$true] %s29_s20 }
   0xf   :  { %s201_s21 = scalar_lea.vmem %s30_s20, 64  ;;  %p206_p6 = scmp.lt.s32.totalorder %s30_s20, %s30_s20 }
  0x10   :  { %p202_p5 = scmp.ne.s32.totalorder %s30_s20, %s201_s21  ;;  %p207_p7 = scmp.lt.s32.totalorder %s201_s21, %s201_s21 }
  0x12   :  { %p208_p8 = por %p207_p7, %p206_p6 }
  0x14   :  { %p209_p9 = pnand %p208_p8, %p202_p5 }
  0x16   :  { %212 = shalt.err (!%p209_p9)
}
  0x17   :  { %32 = dma.hbm_to_vmem [thread:$0]  %s268_s1, 64, %s30_s20, [#allocation6]  }
  0x18   :  { %213 = dma.done.wait [#allocation4], 512  }
  0x19   :  { %214 = vsyncadd [#allocation4], 4294966784 }
  0x1a   :  { %215 = dma.done.wait [#allocation6], 64  }
  0x1b   :  { %216 = vsyncadd [#allocation6], 4294967232  ;;  %v62_v0 = vlaneseq  ;;  %v221_v1 = vmov 1966171168   ;;  %v41_v10 = vld [vmem:[#allocation3] sm:$0xf]  ;;  %v125_v49 = vstv %s269_s2 }
  0x1c   :  { %v60_v2 = vunpack.c.l.s4 %v221_v1  ;;  %v157_v7 = vld.sshfl [vmem:[#allocation5] sm:$0x33 pattern:$0x75316420]  ;;  %v45_v14 = vld [vmem:[#allocation3 + $0x10] sm:$0xf] }
  0x1d   :  { %v63_v3 = vshrl.u32 %v62_v0, 7  ;;  %v58_v8 = vcombine.high %v157_v7, %v157_v7  ;;  %v42_v15 = vld [vmem:[#allocation3 + $0x4] sm:$0xf]  ;;  %v43_v16 = vld [vmem:[#allocation3 + $0x8] sm:$0xf]  ;;  %vm103_vm0 = vcmask 519168  }
  0x1e   :  { %v61_v4 = vunpack.c.0.s8 %v60_v2  ;;  %v46_v21 = vld [vmem:[#allocation3 + $0x14] sm:$0xf]  ;;  %v47_v22 = vld [vmem:[#allocation3 + $0x18] sm:$0xf]  ;;  %v44_v23 = vld [vmem:[#allocation3 + $0xc] sm:$0xf] }
  0x1f   :  { %v77_v6 = vsub.s32 0, %v63_v3  ;;  %v48_v24 = vld [vmem:[#allocation3 + $0x1c] sm:$0xf]  ;;  %vm148_vm1 = vcmask 3072  }
  0x20   :  { %v64_v5 = vsub.s32 %v61_v4, %v63_v3 }
  0x22   :  { %v65_v9 = vrot.slane %v157_v7, %v64_v5  ;;  %v72_v11 = vrot.slane %v58_v8, %v64_v5 }
  0x24   :  { %v73_v12 = vcombine.high %v65_v9, %v65_v9  ;;  %v78_v13 = vrot.slane %v65_v9, %v77_v6  ;;  %v74_v17 = vcombine.high %v72_v11, %v72_v11  ;;  %v82_v18 = vrot.slane %v72_v11, %v77_v6 }
  0x26   :  { %v86_v19 = vrot.slane %v73_v12, %v77_v6  ;;  %v95_v20 = vmul.f32 %v78_v13, %v41_v10  ;;  %v99_v25 = vmul.f32 %v78_v13, %v45_v14  ;;  %v90_v26 = vrot.slane %v74_v17, %v77_v6 }
  0x27   :  { %v96_v27 = vmul.f32 %v82_v18, %v42_v15  ;;  %v100_v30 = vmul.f32 %v82_v18, %v46_v21 }
  0x28   :  { %v97_v28 = vmul.f32 %v86_v19, %v43_v16  ;;  %v104_v29 = vsel %vm103_vm0, %v95_v20, 0.0  ;;  %v101_v31 = vmul.f32 %v86_v19, %v47_v22  ;;  %v111_v32 = vsel %vm103_vm0, %v99_v25, 0.0 }
  0x29   :  { %v98_v33 = vmul.f32 %v90_v26, %v44_v23  ;;  %v105_v34 = vsel %vm103_vm0, %v96_v27, 0.0  ;;  %v102_v36 = vmul.f32 %v90_v26, %v48_v24  ;;  %v112_v38 = vsel %vm103_vm0, %v100_v30, 0.0 }
  0x2a   :  { %v107_v35 = vsel %vm103_vm0, %v97_v28, 0.0  ;;  %v106_v37 = vadd.f32 %v105_v34, %v104_v29  ;;  %v114_v39 = vsel %vm103_vm0, %v101_v31, 0.0  ;;  %v113_v41 = vadd.f32 %v112_v38, %v111_v32 }
  0x2b   :  { %v109_v40 = vsel %vm103_vm0, %v98_v33, 0.0  ;;  %v116_v43 = vsel %vm103_vm0, %v102_v36, 0.0 }
  0x2c   :  { %v108_v42 = vadd.f32 %v107_v35, %v106_v37  ;;  %v115_v44 = vadd.f32 %v114_v39, %v113_v41 }
  0x2e   :  { %v110_v45 = vadd.f32 %v109_v40, %v108_v42  ;;  %v117_v46 = vadd.f32 %v116_v43, %v115_v44 }
  0x30   :  { %v118_v47 = vsel %vm103_vm0, %v110_v45, 0.0  ;;  %v121_v48 = vsel %vm103_vm0, %v117_v46, 0.0 }
  0x31   :  { %119 = vadd.xlane.f32.xlu0 %v118_v47 }
  0x35   :  { %122 = vadd.xlane.f32.xlu0 %v121_v48 }
  0xba   :  { %v120_v50 = vpop.xlane.xlu0 %119 }
  0xbb   :  { %v126_v51 = vadd.f32 %v125_v49, %v120_v50 }
  0xbd   :  { %v158_v52 = vmul.f32 -1.442695, %v126_v51 }
  0xbe   :  { %v123_v53 = vpop.xlane.xlu0 %122 }
  0xbf   :  { %165 = vpow2.f32 %v158_v52  ;;  %v127_v54 = vadd.f32 %v125_v49, %v123_v53 }
  0xc1   :  { %v159_v55 = vmul.f32 -1.442695, %v127_v54 }
  0xc3   :  { %167 = vpow2.f32 %v159_v55 }
  0xcc   :  { %v166_v56 = vpop.eup %165 }
  0xcd   :  { %v134_v57 = vadd.f32 1.0, %v166_v56 }
  0xcf   :  { %169 = vrcp.f32 %v134_v57 }
  0xd0   :  { %v168_v58 = vpop.eup %167 }
  0xd1   :  { %v135_v59 = vadd.f32 1.0, %v168_v58 }
  0xd3   :  { %171 = vrcp.f32 %v135_v59 }
  0xdc   :  { %v170_v60 = vpop.eup %169 }
  0xdd   :  { %v140_v61 = vmul.f32 64.0, %v170_v60 }
  0xdf   :  { %v142_v62 = vadd.f32 0.5, %v140_v61 }
  0xe0   :  { %v172_v63 = vpop.eup %171 }
  0xe1   :  { %v144_v0 = vmax.f32 %v142_v62, 1.0  ;;  %v141_v1 = vmul.f32 64.0, %v172_v63 }
  0xe3   :  { %v146_v2 = vmin.f32 %v144_v0, 64.0  ;;  %v143_v3 = vadd.f32 0.5, %v141_v1 }
  0xe5   :  { %149 = vst.msk [vmem:[%s270_s3] sm:$0xf] %vm148_vm1, %v146_v2  ;;  %v145_v4 = vmax.f32 %v143_v3, 1.0 }
  0xe7   :  { %v147_v5 = vmin.f32 %v145_v4, 64.0 }
  0xe9   :  { %150 = vst.msk [vmem:[%s270_s3 + $0x4] sm:$0xf] %vm148_vm1, %v147_v5 }
  0xea   :  { %155 = vsyncpa [#allocation4], 1 }
  0xeb   :  { %156 = vsyncpa [#allocation6], 1 }

</bundles_post_ra>
